<compile_context>
chip_gen: v7x
topology: tpu7x:2x2x1
jax: 0.10.0
libtpu: 0.0.40
codegen_flags: <defaults>
</compile_context>

<pallas_src>
import functools

import jax
import jax.numpy as jnp
from jax.experimental import pallas as pl
from jax.experimental.pallas import tpu as pltpu


# ----------------------------------------------------------------------------
# NonNegativeParametrizer (compressai-style), reproduced in plain JAX (glue).
# ----------------------------------------------------------------------------
_REPARAM_OFFSET = 2.0 ** -18


def nnp_init(x, minimum=0.0):
    pedestal = _REPARAM_OFFSET ** 2
    return jnp.sqrt(jnp.maximum(x + pedestal, pedestal))


def nnp_forward(x, minimum=0.0):
    pedestal = _REPARAM_OFFSET ** 2
    bound = (minimum + pedestal) ** 0.5
    out = jnp.maximum(x, bound)          # LowerBound (forward semantics)
    return out ** 2 - pedestal


# ----------------------------------------------------------------------------
# Pallas kernel:  norm = gamma @ (x*x) + beta ;  out = x * f(norm)
# x_ref: (C, ts) channels-first tile, gamma_ref: (C, C), beta_ref: (C, 1).
# ----------------------------------------------------------------------------
def _gdn_kernel(x_ref, gamma_ref, beta_ref, o_ref, *, inverse):
    x = x_ref[...].astype(jnp.float32)                           # (C, ts)
    xsq = x * x                                                  # VPU
    norm = jnp.dot(gamma_ref[...], xsq,
                   preferred_element_type=jnp.float32)           # MXU (C, ts)
    norm = norm + beta_ref[...]                                  # (C,1) bcast
    scale = jnp.sqrt(norm) if inverse else jax.lax.rsqrt(norm)   # EUP
    o_ref[...] = (x * scale).astype(o_ref.dtype)


def _pick_spatial_tile(c_pad, hw):
    """Largest lane-aligned tile s.t. x + out, double-buffered, fit ~24 MiB."""
    budget_bytes = 24 * 1024 * 1024
    # 2 arrays (x, out) x 2 pipeline buffers, counted at f32 width (worst case).
    ts = budget_bytes // (4 * c_pad * 4)
    ts = max(128, min(ts, 8192))
    ts = (ts // 128) * 128               # lane-aligned tile
    if hw <= ts:
        return hw                        # full spatial extent is always legal
    return ts


def gdn_forward(x_nchw, beta_param, gamma_param, *, inverse=False,
                beta_min=1e-6):
    """GDN forward. x_nchw: (N, C, H, W)."""
    N, C, H, W = x_nchw.shape
    HW = H * W
    in_dtype = x_nchw.dtype

    # Effective (reparametrized) parameters — tiny glue, plain JAX.
    beta = nnp_forward(beta_param, minimum=float(beta_min)).astype(jnp.float32)
    gamma = nnp_forward(gamma_param, minimum=0.0).astype(jnp.float32)  # (C, C)

    # Channels-first slab; reshape only (no data movement).
    x3 = x_nchw.reshape(N, C, HW)

    # Pad channels to sublane granularity (8) only if needed (tiny test case).
    C_pad = ((C + 7) // 8) * 8
    if C_pad != C:
        x3 = jnp.pad(x3, ((0, 0), (0, C_pad - C), (0, 0)))
        gamma = jnp.pad(gamma, ((0, C_pad - C), (0, C_pad - C)))
        # beta=1 on padded rows keeps norm=1 there -> rsqrt finite, out stays 0.
        beta = jnp.pad(beta, (0, C_pad - C), constant_values=1.0)
    beta_col = beta.reshape(C_pad, 1)

    ts = _pick_spatial_tile(C_pad, HW)
    n_s = pl.cdiv(HW, ts)

    kernel = functools.partial(_gdn_kernel, inverse=inverse)

    itemsize = jnp.dtype(in_dtype).itemsize
    cost = pl.CostEstimate(
        flops=2 * N * HW * C_pad * C_pad + 4 * N * HW * C_pad,
        transcendentals=N * HW * C_pad,
        bytes_accessed=2 * N * C_pad * HW * itemsize
        + C_pad * C_pad * 4 + C_pad * 4,
    )

    out3 = pl.pallas_call(
        kernel,
        out_shape=jax.ShapeDtypeStruct((N, C_pad, HW), in_dtype),
        grid_spec=pltpu.PrefetchScalarGridSpec(
            num_scalar_prefetch=0,
            grid=(N, n_s),
            in_specs=[
                # x tile: (C_pad, ts), batch dim squeezed out.
                pl.BlockSpec((None, C_pad, ts), lambda n, s: (n, 0, s)),
                # gamma and beta stay resident across the whole grid.
                pl.BlockSpec((C_pad, C_pad), lambda n, s: (0, 0)),
                pl.BlockSpec((C_pad, 1), lambda n, s: (0, 0)),
            ],
            out_specs=pl.BlockSpec((None, C_pad, ts), lambda n, s: (n, 0, s)),
        ),
        compiler_params=pltpu.CompilerParams(
            dimension_semantics=("parallel", "parallel"),
            vmem_limit_bytes=32 * 1024 * 1024,
        ),
        cost_estimate=cost,
    )(x3, gamma, beta_col)

    out = out3.reshape(N, C_pad, H, W)
    if C_pad != C:
        out = out[:, :C]
    return out


# ----------------------------------------------------------------------------
# Pure-JAX reference (sanity check only).
# ----------------------------------------------------------------------------
def gdn_reference(x_nchw, beta_param, gamma_param, *, inverse=False,
                  beta_min=1e-6):
    N, C, H, W = x_nchw.shape
    beta = nnp_forward(beta_param, minimum=float(beta_min))
    gamma = nnp_forward(gamma_param, minimum=0.0)
    xsq = x_nchw ** 2
    # 1x1 conv == einsum over channels.
    norm = jnp.einsum('nchw,oc->nohw', xsq, gamma,
                      precision=jax.lax.Precision.HIGHEST)
    norm = norm + beta.reshape(1, C, 1, 1)
    scale = jnp.sqrt(norm) if inverse else jax.lax.rsqrt(norm)
    return x_nchw * scale


if __name__ == "__main__":
    key = jax.random.PRNGKey(0)

    N, C, H, W = 2, 4, 16, 16
    beta_min = 1e-6
    gamma_init = 0.1
    inverse = False

    # Deterministic parameter init, mirroring GDN.__init__:
    #   beta  = NonNegativeParametrizer(min=beta_min).init(ones(C))
    #   gamma = NonNegativeParametrizer().init(gamma_init * eye(C))
    beta_param = nnp_init(jnp.ones((C,), jnp.float32), minimum=float(beta_min))
    gamma_param = nnp_init(gamma_init * jnp.eye(C, dtype=jnp.float32),
                           minimum=0.0)

    x = jax.random.normal(key, (N, C, H, W), dtype=jnp.float32)

    out = gdn_forward(x, beta_param, gamma_param,
                      inverse=inverse, beta_min=beta_min)
    out = jax.block_until_ready(out)

    ref = gdn_reference(x, beta_param, gamma_param,
                        inverse=inverse, beta_min=beta_min)
    assert out.shape == (N, C, H, W)
    assert jnp.allclose(out, ref, atol=1e-4, rtol=1e-4), "mismatch vs reference"

    print("KERNEL_OK")
</pallas_src>

<mosaic_0001>
module attributes {stable_mosaic.version = 11 : i64} {
  func.func @_gdn_kernel(%arg0: i32, %arg1: i32, %arg2: memref<1x8x256xf32, #tpu.memory_space<vmem>>, %arg3: memref<8x8xf32, #tpu.memory_space<vmem>>, %arg4: memref<8x1xf32, #tpu.memory_space<vmem>>, %arg5: memref<1x8x256xf32, #tpu.memory_space<vmem>>) attributes {dimension_semantics = [#tpu.dimension_semantics<parallel>, #tpu.dimension_semantics<parallel>], iteration_bounds = array<i64: 2, 1>, scalar_prefetch = 0 : i64, scratch_operands = 0 : i64, tpu.core_type = #tpu.core_type<tc>, window_params = [{transform_indices = @transform_0, window_bounds = array<i64: 1, 8, 256>}, {pipeline_mode = #tpu.pipeline_mode<synchronous>, transform_indices = @transform_1, window_bounds = array<i64: 8, 8>}, {pipeline_mode = #tpu.pipeline_mode<synchronous>, transform_indices = @transform_2, window_bounds = array<i64: 8, 1>}, {transform_indices = @transform_3, window_bounds = array<i64: 1, 8, 256>}]} {
    %c0 = arith.constant 0 : index
    %c0_0 = arith.constant 0 : index
    %c0_1 = arith.constant 0 : index
    %0 = vector.load %arg2[%c0, %c0_0, %c0_1] : memref<1x8x256xf32, #tpu.memory_space<vmem>>, vector<1x8x256xf32>
    %1 = vector.shape_cast %0 : vector<1x8x256xf32> to vector<8x256xf32>
    %2 = arith.mulf %1, %1 : vector<8x256xf32>
    %c0_2 = arith.constant 0 : index
    %c0_3 = arith.constant 0 : index
    %3 = vector.load %arg3[%c0_2, %c0_3] : memref<8x8xf32, #tpu.memory_space<vmem>>, vector<8x8xf32>
    %cst = arith.constant dense<0.000000e+00> : vector<8x256xf32>
    %4 = tpu.matmul %3, %2, %cst {dimension_numbers = #tpu.dot_dimension_numbers<[1], [0], [0], [1], [0, 0, 1, 1], [], []>} : vector<8x8xf32>, vector<8x256xf32>, vector<8x256xf32> -> vector<8x256xf32>
    %c0_4 = arith.constant 0 : index
    %c0_5 = arith.constant 0 : index
    %5 = vector.load %arg4[%c0_4, %c0_5] : memref<8x1xf32, #tpu.memory_space<vmem>>, vector<8x1xf32>
    %6 = vector.broadcast %5 : vector<8x1xf32> to vector<8x256xf32>
    %7 = arith.addf %4, %6 : vector<8x256xf32>
    %8 = math.rsqrt %7 : vector<8x256xf32>
    %9 = arith.mulf %1, %8 : vector<8x256xf32>
    %c0_6 = arith.constant 0 : index
    %c0_7 = arith.constant 0 : index
    %c0_8 = arith.constant 0 : index
    %10 = vector.load %arg5[%c0_6, %c0_7, %c0_8] : memref<1x8x256xf32, #tpu.memory_space<vmem>>, vector<1x8x256xf32>
    %11 = vector.shape_cast %10 : vector<1x8x256xf32> to vector<8x256xf32>
    %12 = vector.shape_cast %9 : vector<8x256xf32> to vector<1x8x256xf32>
    tpu.vector_store %arg5[%c0_6, %c0_7, %c0_8], %12 {strides = array<i32>} : memref<1x8x256xf32, #tpu.memory_space<vmem>>, vector<1x8x256xf32>,
    return
  }
  func.func @transform_0(%arg0: i32, %arg1: i32) -> (i32, i32, i32) {
    %c0_i32 = arith.constant 0 : i32
    %c0_i32_0 = arith.constant 0 : i32
    return %arg0, %c0_i32, %arg1 : i32, i32, i32
  }
  func.func @transform_1(%arg0: i32, %arg1: i32) -> (i32, i32) {
    %c0_i32 = arith.constant 0 : i32
    %c0_i32_0 = arith.constant 0 : i32
    %c0_i32_1 = arith.constant 0 : i32
    return %c0_i32, %c0_i32_0 : i32, i32
  }
  func.func @transform_2(%arg0: i32, %arg1: i32) -> (i32, i32) {
    %c0_i32 = arith.constant 0 : i32
    %c0_i32_0 = arith.constant 0 : i32
    %c0_i32_1 = arith.constant 0 : i32
    return %c0_i32, %c0_i32_0 : i32, i32
  }
  func.func @transform_3(%arg0: i32, %arg1: i32) -> (i32, i32, i32) {
    %c0_i32 = arith.constant 0 : i32
    %c0_i32_0 = arith.constant 0 : i32
    return %arg0, %c0_i32, %arg1 : i32, i32, i32
  }
}

</mosaic_0001>

<bundles_post_ra>
// kernel: tpu_custom_call.1
= control target key start
LH: loop header
LB: loop body
LE: loop exit
PB: predicated region body
PF: predicated region fallthrough
CT: control target
= control target key end

     0   :  { %8 = vsyncpa [#allocation3], 0  ;;  %s803_s0 = inlined_call_operand.hbm [shape: f32[2,8,256], index: 0, kind: input, shape index: {}]   ;;  %s804_s1 = inlined_call_operand.vmem [shape: f32[8,8], index: 1, kind: input, shape index: {}]   ;;  %s805_s2 = inlined_call_operand.vmem [shape: f32[8,1], index: 2, kind: input, shape index: {}]   ;;  %s806_s3 = inlined_call_operand.hbm [shape: f32[2,8,256], index: 3, kind: output, shape index: {}]  }
   0x1   :  { %10 = vsyncpa [#allocation3 + $0x1], 0 }
   0x2   :  { %11 = vsyncpa [#allocation4], 0 }
   0x3   :  { %13 = vsyncpa [#allocation4 + $0x1], 0  ;;  %s625_s12 = smov 0   ;;  %s627_s13 = smov 0  }
   0x4   :  { %s629_s14 = smov 0   ;;  %s631_s15 = smov 0  }
   0x5   :  { %s633_s16 = smov 0   ;;  %s635_s17 = smov 0  }
   0x6 LB: > { %s400_s18 = sadd.s32 4294967295, %s599_s17   ;;  %s401_s19 = sadd.s32 4294967294, %s599_s17   ;;  %s599_s17 = sphi %s635_s17, %s19_s17   ;;  %s595_s16 = sphi %s633_s16, %s822_s16   ;;  %s591_s15 = sphi %s631_s15, %s821_s15   ;;  %s587_s14 = sphi %s629_s14, %s820_s14   ;;  %s583_s13 = sphi %s627_s13, %s819_s13   ;;  %s579_s12 = sphi %s625_s12, %s818_s12  }
   0x7   : > { %s31_s20 = sadd.s32 1, %s595_s16  ;;  %s40_s21 = sadd.s32 1, %s587_s14 }
   0x8   : > { %p33_p0 = scmp.ge.s32.totalorder %s31_s20, 2  ;;  %p47_p1 = scmp.ne.s32.totalorder %s587_s14, %s583_s13 }
   0x9   : > { %p48_p2 = scmp.eq.s32.totalorder %s599_s17, 0  ;;  %p53_p3 = scmp.ne.s32.totalorder %s583_s13, %s579_s12 }
   0xa   : > { %s824_s20 = smov (%p33_p0, %s31_s20), 0  ;;  %p54_p5 = scmp.eq.s32.totalorder %s400_s18, 0 }
   0xb   : > { %p666_p4 = por %p48_p2, %p47_p1  ;;  %s35_s23 = ssub.s32 %s595_s16, %s824_s20 }
   0xc   : > { %p121_p6 = scmp.eq.s32.totalorder %s400_s18, 1  ;;  %p38_p7 = scmp.eq.s32.totalorder %s35_s23, 0 }
   0xd   : > { %p672_p8 = por %p54_p5, %p53_p3  ;;  %p127_p10 = scmp.eq.s32.totalorder %s401_s19, 1 }
   0xe   : > { %p676_p9 = por %p121_p6, %p47_p1  ;;  %p430_p13 = scmp.lt.s32.totalorder %s599_s17, 2 }
   0xf   : > { %s681_s26 = scalar_select %p38_p7, %s587_s14, %s40_s21  }
  0x10   : > { %s810_s25 = scalar_select %p676_p9, 1, 0 }
  0x11   : > { %p683_p11 = por %p127_p10, %p53_p3  ;;  %s153_s28 = sand.u32 1, %s587_s14  }
  0x12   : > { %s404_s29 = sshll.u32 %s153_s28, 4  ;;  %s416_s30 = sshll.u32 %s595_s16, 8 }
  0x13   : > { %s811_s27 = scalar_select %p683_p11, 1, 0 }
  0x14   : > { %s694_s6 = scalar_lea.hbm %s803_s0, %s416_s30  ;;  %s157_s7 = scalar_lea.vmem [#allocation2], %s404_s29 }
  0x15   : > { %s167_s8 = sshll.u32 %s157_s7, 4  ;;  %p700_p0 = pnand %p430_p13, %p666_p4  ;;  %s696_s8 = int_to_ptr.vmem [resolvable:$true] %s167_s8 }
  0x16   : > { %s154_s10 = scalar_lea.sflag [#allocation3], %s153_s28  ;;  %s487_s11 = scalar_lea.hbm %s694_s6, 256 }
  0x17   : > { %p488_p3 = scmp.ne.s32.totalorder %s694_s6, %s487_s11  ;;  %p489_p5 = pneg %p700_p0 }
  0x18   : > { %s492_s21 = scalar_lea.hbm %s803_s0, 512  ;;  %p493_p4 = scmp.lt.u32.totalorder %s694_s6, %s803_s0 }
  0x19   : > { %p490_p6 = pnand %p489_p5, %p488_p3  ;;  %p494_p10 = scmp.lt.u32.totalorder %s492_s21, %s487_s11 }
  0x1a   : > { %p496_p12 = scmp.lt.u32.totalorder %s487_s11, %s694_s6 }
  0x1b   : > { %p491_p7 = pneg %p490_p6  ;;  %p495_p13 = por %p494_p10, %p493_p4 }
  0x1d   : > { %p497_p1 = por %p496_p12, %p495_p13 }
  0x1f   : > { %p498_p2 = pnand %p497_p1, %p491_p7 }
  0x21   : > { %501 = shalt.err (!%p498_p2)
}
  0x22   : > { %s502_s28 = scalar_lea.vmem %s696_s8, 256  ;;  %s601_s29 = smov [#allocation2]  }
  0x23   : > { %p503_p3 = scmp.ne.s32.totalorder %s696_s8, %s502_s28  ;;  %s507_s30 = sshll.u32 %s601_s29, 4  ;;  %s508_s30 = int_to_ptr.vmem [resolvable:$false] %s507_s30 }
  0x24   : > { %s509_s4 = scalar_lea.vmem %s508_s30, 512  ;;  %p510_p9 = scmp.lt.s32.totalorder %s696_s8, %s508_s30 }
  0x25   : > { %p505_p6 = pnand %p503_p3, %p489_p5  ;;  %p511_p4 = scmp.lt.s32.totalorder %s509_s4, %s502_s28 }
  0x27   : > { %p506_p11 = pneg %p505_p6  ;;  %p512_p10 = por %p511_p4, %p510_p9 }
  0x29   : > { %p513_p12 = pnand %p512_p10, %p506_p11 }
  0x2b   : > { %516 = shalt.err (!%p513_p12)
}
  0x2c   : > { %425 = dma.hbm_to_vmem [thread:$0]  (!%p700_p0), %s694_s6, 256, %s696_s8, %s154_s10  }
  0x2d   : > { %p813_p1 = scmp.lt.s32.totalorder %s599_s17, 3  ;;  %p814_p2 = scmp.ge.s32.totalorder %s599_s17, 1 }
  0x2f   : > { %p173_p5 = pnand %p814_p2, %p813_p1 }
  0x30   : > { %s736_s5 = sand.u32 (!%p173_p5), 1, %s583_s13  }
  0x31   : > { %176 = sbr.rel (%p173_p5) target bundleno = 304 (0x130), region = 32  ;;  %s408_s7 = sshll.u32 (!%p173_p5), %s736_s5, 4 }
  0x32   : > { %s179_s11 = scalar_lea.sflag (!%p173_p5), [#allocation3], %s736_s5  ;;  %s182_s18 = scalar_lea.vmem (!%p173_p5), [#allocation2], %s408_s7 }
  0x38   : > { %570 = dma.done.wait (%p672_p8), %s179_s11, 256  }
  0x39   : > { %572 = vsyncadd (%p672_p8), %s179_s11, 4294967040  ;;  %v602_v0 = vmov 0.0   ;;  %v603_v1 = vmov 0   ;;  %v208_v2 = vld [vmem:[%s182_s18 + $0x8] sm:$0xff]  ;;  %v207_v3 = vld [vmem:[%s182_s18] sm:$0xff]  ;;  %vm218_vm0 = vcmask 64512  }
  0x3a   : > { %286 = vmatprep.mubr.f32.mxu0 %v602_v0  ;;  %482 = vset.pattern.permute.xlu0 %v603_v1  ;;  %v210_v4 = vmul.f32 %v208_v2, %v208_v2  ;;  %v209_v5 = vmul.f32 %v207_v3, %v207_v3  ;;  %v212_v6 = vld [vmem:[%s805_s2] sm:$0xff]  ;;  %s417_s24 = sshll.u32 %s591_s15, 8  ;;  %s204_s19 = scalar_lea.vmem [#allocation5], %s408_s7 }
  0x3b   : > { %v211_v7 = vld [vmem:[%s804_s1] sm:$0xff]  ;;  %215 = vperm.xlu0 %482, %v212_v6   ;;  %s316_s21 = sshll.u32 %s204_s19, 4  ;;  %s754_s28 = scalar_lea.hbm %s806_s3, %s417_s24  ;;  %s756_s21 = int_to_ptr.vmem [resolvable:$true] %s316_s21 }
  0x3c   : > { %222 = vmatprep.subr.mxu0 %v210_v4  ;;  %s300_s29 = scalar_lea.sflag [#allocation4], %s736_s5  ;;  %s517_s15 = scalar_lea.vmem %s756_s21, 256 }
  0x3d   : > { %223 = vmatpush1.msra.mxu0 %v209_v5  ;;  %p518_p8 = scmp.ne.s32.totalorder %s756_s21, %s517_s15  ;;  %p815_p9 = scmp.ne.s32.totalorder %s810_s25, 0 }
  0x3e   : > { %410 = vmatmul.mubr.msk.f32.vlgmr.msra.gmra.mrb[0].mxu0 %vm218_vm0, %v211_v7  ;;  %s604_s30 = smov [#allocation5]  }
  0x3f   : > { %p519_p11 = pnand %p518_p8, %p815_p9  ;;  %s521_s4 = sshll.u32 %s604_s30, 4  ;;  %s522_s4 = int_to_ptr.vmem [resolvable:$false] %s521_s4 }
  0x40   : > { %s523_s7 = scalar_lea.vmem %s522_s4, 512  ;;  %p524_p7 = scmp.lt.s32.totalorder %s756_s21, %s522_s4 }
  0x41   : > { %p520_p0 = pneg %p519_p11  ;;  %p525_p13 = scmp.lt.s32.totalorder %s523_s7, %s517_s15 }
  0x43   : > { %p526_p3 = por %p525_p13, %p524_p7 }
  0x45   : > { %p527_p6 = pnand %p526_p3, %p520_p0 }
  0xba   : > { %v216_v8 = vpop.permute.xlu0 %215 }
 0x111   : > { %v288_v9 = vpop.f32.mrb[0].mxu0 }
 0x112   : > { %v289_v10 = vadd.f32 %v288_v9, %v216_v8  ;;  %v290_v11 = vpop.f32.mrb[1].mxu0 }
 0x113   : > { %v291_v12 = vadd.f32 %v290_v11, %v216_v8 }
 0x114   : > { %483 = vrsqrt.f32 %v289_v10 }
 0x115   : > { %485 = vrsqrt.f32 %v291_v12 }
 0x11e   : > { %v484_v13 = vpop.eup %483 }
 0x11f   : > { %v486_v14 = vpop.eup %485  ;;  %v295_v15 = vmul.f32 %v484_v13, %v207_v3 }
 0x120   : > { %v296_v16 = vmul.f32 %v486_v14, %v208_v2 }
 0x121   : > { %297 = vst [vmem:[%s204_s19] sm:$0xff] %v295_v15 }
 0x122   : > { %298 = vst [vmem:[%s204_s19 + $0x8] sm:$0xff] %v296_v16 }
 0x123   : > { %530 = shalt.err (!%p527_p6)
}
 0x124   : > { %s531_s5 = scalar_lea.hbm %s754_s28, 256  ;;  %s535_s6 = scalar_lea.hbm %s806_s3, 512 }
 0x125   : > { %p532_p4 = scmp.ne.s32.totalorder %s754_s28, %s531_s5  ;;  %p536_p1 = scmp.lt.u32.totalorder %s754_s28, %s806_s3 }
 0x126   : > { %p537_p2 = scmp.lt.u32.totalorder %s535_s6, %s531_s5  ;;  %p539_p8 = scmp.lt.u32.totalorder %s531_s5, %s754_s28 }
 0x127   : > { %p533_p10 = pnand %p532_p4, %p815_p9 }
 0x128   : > { %p538_p5 = por %p537_p2, %p536_p1 }
 0x129   : > { %p534_p12 = pneg %p533_p10 }
 0x12a   : > { %p540_p11 = por %p539_p8, %p538_p5 }
 0x12c   : > { %p541_p0 = pnand %p540_p11, %p534_p12 }
 0x12e   : > { %544 = shalt.err (!%p541_p0)
}
 0x12f   : > { %420 = dma.vmem_to_hbm [thread:$0]  (%p815_p9), %s756_s21, 256, %s754_s28, %s300_s29  }
 0x130 PF: > { %s328_s10 = sand.u32 1, %s579_s12   ;;  %p816_p7 = scmp.ne.s32.totalorder %s811_s27, 0 }
 0x131   : > { %p817_p13 = scmp.ge.s32.totalorder %s599_s17, 2  ;;  %s329_s24 = scalar_lea.sflag [#allocation4], %s328_s10 }
 0x133   : > { %p427_p3 = pnand %p817_p13, %p816_p7 }
 0x135   : > { %574 = dma.done.wait (!%p427_p3), %s329_s24, 256  }
 0x136   : > { %576 = vsyncadd (!%p427_p3), %s329_s24, 4294967040  ;;  %s19_s17 = sadd.s32 1, %s599_s17   ;;  %s818_s12 = smov %s583_s13 }
 0x137   : > { %p16_p6 = scmp.ge.s32.totalorder %s19_s17, 4   ;;  %s819_s13 = smov %s587_s14 }
 0x138   : > { %s820_s14 = smov %s681_s26  ;;  %s821_s15 = smov %s595_s16 }
 0x139   : > { %s822_s16 = smov %s824_s20  ;;  %18 = sbr.rel (!%p16_p6) target bundleno = 6 (0x6), region = 77 }
 0x140   :  { %334 = vsyncpa [#allocation3], 1 }
 0x141   :  { %336 = vsyncpa [#allocation3 + $0x1], 1 }
 0x142   :  { %337 = vsyncpa [#allocation4], 1 }
 0x143   :  { %339 = vsyncpa [#allocation4 + $0x1], 1 }

</bundles_post_ra>
